<compile_context>
chip_gen: v5e
topology: v5e:2x2
jax: 0.10.0
libtpu: 0.0.40
codegen_flags: <defaults>
</compile_context>

<pallas_src>
import functools

import jax
import jax.numpy as jnp
from jax.experimental import pallas as pl
from jax.experimental.pallas import tpu as pltpu


def _int_pow(base, p, cache):
    """base**p for static int p >= 1 via repeated multiply, memoized."""
    if p in cache:
        return cache[p]
    val = base if p == 1 else _int_pow(base, p - 1, cache) * base
    cache[p] = val
    return val


def _poly_kernel(const_ref, x0_ref, x1_ref, o_ref, *, powers):
    # const_ref: SMEM (1, M) float32 scalar table (scalar prefetch)
    # x0_ref/x1_ref: VMEM (TR, 128) float32 -- lane+sublane dense coord tiles
    # o_ref:         VMEM (TR, 128) float32
    x0 = x0_ref[...]
    x1 = x1_ref[...]
    x0_cache, x1_cache = {}, {}

    acc = jnp.zeros_like(x0)
    # M is small and static -> unrolled trace-time loop over monomials.
    for m, (p0, p1) in enumerate(powers):
        c = const_ref[0, m]  # hoist scalar read once per monomial
        term = None
        for base, cache, p in ((x0, x0_cache, p0), (x1, x1_cache, p1)):
            if isinstance(p, int):
                f = None if p == 0 else _int_pow(base, p, cache)
            else:
                # non-integer / negative exponent: fall back to EUP pow
                f = jnp.power(base, jnp.float32(p))
            if f is not None:
                term = f if term is None else term * f
        acc = acc + (c if term is None else c * term)
    o_ref[...] = acc


def _normalize_powers(powers):
    """Static normalization: integer-valued nonneg powers -> python int."""
    norm = []
    for p0, p1 in powers:
        def conv(p):
            fp = float(p)
            ip = int(round(fp))
            return ip if (fp == ip and ip >= 0) else fp
        norm.append((conv(p0), conv(p1)))
    return tuple(norm)


def polynomial_fwd(points, consts, powers, *, tile_rows=512, lanes=128):
    """points: (N, 2); consts: (M,); powers: M pairs of exponents -> (N,)."""
    points = jnp.asarray(points, jnp.float32)
    consts = jnp.asarray(consts, jnp.float32)
    powers = _normalize_powers(powers)
    n = points.shape[0]
    m = len(powers)

    # Lane-dense rows of 128 points; sublane-dense tiles of tile_rows rows.
    rows = pl.cdiv(n, lanes)
    if rows > tile_rows:
        rows = pl.cdiv(rows, tile_rows) * tile_rows
        blk_rows = tile_rows
    else:
        blk_rows = max(int(rows), 1)   # single block covering the whole array
        rows = blk_rows
    n_pad = rows * lanes

    pts_pad = jnp.zeros((n_pad, 2), jnp.float32).at[:n].set(points)
    x0 = pts_pad[:, 0].reshape(rows, lanes)
    x1 = pts_pad[:, 1].reshape(rows, lanes)
    const_tbl = consts.reshape(1, m)

    out = pl.pallas_call(
        functools.partial(_poly_kernel, powers=powers),
        out_shape=jax.ShapeDtypeStruct((rows, lanes), jnp.float32),
        grid_spec=pltpu.PrefetchScalarGridSpec(
            num_scalar_prefetch=1,
            grid=(rows // blk_rows,),
            in_specs=[pl.BlockSpec((blk_rows, lanes), lambda i, c: (i, 0)),
                      pl.BlockSpec((blk_rows, lanes), lambda i, c: (i, 0))],
            out_specs=pl.BlockSpec((blk_rows, lanes), lambda i, c: (i, 0)),
        ),
        compiler_params=pltpu.CompilerParams(
            dimension_semantics=("parallel",)),
    )(const_tbl, x0, x1)
    return out.reshape(-1)[:n]


def polynomial_ref(points, consts, powers):
    powers = _normalize_powers(powers)
    out = jnp.zeros((points.shape[0],), jnp.float32)
    for i, (p0, p1) in enumerate(powers):
        out = out + consts[i] * (points[:, 0] ** p0) * (points[:, 1] ** p1)
    return out


if __name__ == "__main__":
    key = jax.random.PRNGKey(0)
    k1, k2 = jax.random.split(key)

    N = 200  # number of 2-D points
    powers = ((0, 0), (1, 0), (0, 1), (2, 0), (1, 1), (0, 2), (3, 2))
    M = len(powers)

    points = jax.random.normal(k1, (N, 2), jnp.float32)
    consts = jax.random.normal(k2, (M,), jnp.float32)

    out = polynomial_fwd(points, consts, powers)
    out = jax.block_until_ready(out)

    ref = polynomial_ref(points, consts, powers)
    assert out.shape == (N,)
    assert jnp.allclose(out, ref, rtol=1e-5, atol=1e-5), "mismatch vs reference"

    print("KERNEL_OK")
</pallas_src>

<mosaic_0001>
module attributes {stable_mosaic.version = 11 : i64} {
  func.func @_poly_kernel(%arg0: i32, %arg1: memref<1x7xf32, #tpu.memory_space<smem>>, %arg2: memref<2x128xf32, #tpu.memory_space<vmem>>, %arg3: memref<2x128xf32, #tpu.memory_space<vmem>>, %arg4: memref<2x128xf32, #tpu.memory_space<vmem>>) attributes {dimension_semantics = [#tpu.dimension_semantics<parallel>], iteration_bounds = array<i64: 1>, scalar_prefetch = 1 : i64, scratch_operands = 0 : i64, tpu.core_type = #tpu.core_type<tc>, window_params = [{transform_indices = @transform_0, window_bounds = array<i64: 2, 128>}, {transform_indices = @transform_1, window_bounds = array<i64: 2, 128>}, {transform_indices = @transform_2, window_bounds = array<i64: 2, 128>}]} {
    %c0 = arith.constant 0 : index
    %c0_0 = arith.constant 0 : index
    %0 = vector.load %arg2[%c0, %c0_0] : memref<2x128xf32, #tpu.memory_space<vmem>>, vector<2x128xf32>
    %c0_1 = arith.constant 0 : index
    %c0_2 = arith.constant 0 : index
    %1 = vector.load %arg3[%c0_1, %c0_2] : memref<2x128xf32, #tpu.memory_space<vmem>>, vector<2x128xf32>
    %cst = arith.constant 0.000000e+00 : f32
    %2 = vector.broadcast %cst : f32 to vector<2x128xf32>
    %c0_3 = arith.constant 0 : index
    %c0_4 = arith.constant 0 : index
    %3 = memref.load %arg1[%c0_3, %c0_4] : memref<1x7xf32, #tpu.memory_space<smem>>
    %4 = vector.broadcast %3 : f32 to vector<2x128xf32>
    %5 = arith.addf %2, %4 : vector<2x128xf32>
    %c0_5 = arith.constant 0 : index
    %c1 = arith.constant 1 : index
    %6 = memref.load %arg1[%c0_5, %c1] : memref<1x7xf32, #tpu.memory_space<smem>>
    %7 = vector.broadcast %6 : f32 to vector<2x128xf32>
    %8 = arith.mulf %7, %0 : vector<2x128xf32>
    %9 = arith.addf %5, %8 : vector<2x128xf32>
    %c0_6 = arith.constant 0 : index
    %c2 = arith.constant 2 : index
    %10 = memref.load %arg1[%c0_6, %c2] : memref<1x7xf32, #tpu.memory_space<smem>>
    %11 = vector.broadcast %10 : f32 to vector<2x128xf32>
    %12 = arith.mulf %11, %1 : vector<2x128xf32>
    %13 = arith.addf %9, %12 : vector<2x128xf32>
    %c0_7 = arith.constant 0 : index
    %c3 = arith.constant 3 : index
    %14 = memref.load %arg1[%c0_7, %c3] : memref<1x7xf32, #tpu.memory_space<smem>>
    %15 = arith.mulf %0, %0 : vector<2x128xf32>
    %16 = vector.broadcast %14 : f32 to vector<2x128xf32>
    %17 = arith.mulf %16, %15 : vector<2x128xf32>
    %18 = arith.addf %13, %17 : vector<2x128xf32>
    %c0_8 = arith.constant 0 : index
    %c4 = arith.constant 4 : index
    %19 = memref.load %arg1[%c0_8, %c4] : memref<1x7xf32, #tpu.memory_space<smem>>
    %20 = arith.mulf %0, %1 : vector<2x128xf32>
    %21 = vector.broadcast %19 : f32 to vector<2x128xf32>
    %22 = arith.mulf %21, %20 : vector<2x128xf32>
    %23 = arith.addf %18, %22 : vector<2x128xf32>
    %c0_9 = arith.constant 0 : index
    %c5 = arith.constant 5 : index
    %24 = memref.load %arg1[%c0_9, %c5] : memref<1x7xf32, #tpu.memory_space<smem>>
    %25 = arith.mulf %1, %1 : vector<2x128xf32>
    %26 = vector.broadcast %24 : f32 to vector<2x128xf32>
    %27 = arith.mulf %26, %25 : vector<2x128xf32>
    %28 = arith.addf %23, %27 : vector<2x128xf32>
    %c0_10 = arith.constant 0 : index
    %c6 = arith.constant 6 : index
    %29 = memref.load %arg1[%c0_10, %c6] : memref<1x7xf32, #tpu.memory_space<smem>>
    %30 = arith.mulf %15, %0 : vector<2x128xf32>
    %31 = arith.mulf %30, %25 : vector<2x128xf32>
    %32 = vector.broadcast %29 : f32 to vector<2x128xf32>
    %33 = arith.mulf %32, %31 : vector<2x128xf32>
    %34 = arith.addf %28, %33 : vector<2x128xf32>
    %c0_11 = arith.constant 0 : index
    %c0_12 = arith.constant 0 : index
    %35 = vector.load %arg4[%c0_11, %c0_12] : memref<2x128xf32, #tpu.memory_space<vmem>>, vector<2x128xf32>
    tpu.vector_store %arg4[%c0_11, %c0_12], %34 {strides = array<i32>} : memref<2x128xf32, #tpu.memory_space<vmem>>, vector<2x128xf32>,
    return
  }
  func.func @transform_0(%arg0: i32, %arg1: memref<1x7xf32, #tpu.memory_space<smem>>) -> (i32, i32) {
    %c0_i32 = arith.constant 0 : i32
    %c0_i32_0 = arith.constant 0 : i32
    return %arg0, %c0_i32 : i32, i32
  }
  func.func @transform_1(%arg0: i32, %arg1: memref<1x7xf32, #tpu.memory_space<smem>>) -> (i32, i32) {
    %c0_i32 = arith.constant 0 : i32
    %c0_i32_0 = arith.constant 0 : i32
    return %arg0, %c0_i32 : i32, i32
  }
  func.func @transform_2(%arg0: i32, %arg1: memref<1x7xf32, #tpu.memory_space<smem>>) -> (i32, i32) {
    %c0_i32 = arith.constant 0 : i32
    %c0_i32_0 = arith.constant 0 : i32
    return %arg0, %c0_i32 : i32, i32
  }
}

</mosaic_0001>

<bundles_post_ra>
// kernel: tpu_custom_call.1
= control target key start
LH: loop header
LB: loop body
LE: loop exit
PB: predicated region body
PF: predicated region fallthrough
CT: control target
= control target key end

     0   :  { %s204_s15 = smov [#allocation3]   ;;  %s240_s0 = inlined_call_operand.hbm [shape: f32[1,7], index: 0, kind: input, shape index: {}]   ;;  %s241_s1 = inlined_call_operand.hbm [shape: f32[2,128], index: 1, kind: input, shape index: {}]   ;;  %s242_s2 = inlined_call_operand.hbm [shape: f32[2,128], index: 2, kind: input, shape index: {}]   ;;  %s243_s3 = inlined_call_operand.hbm [shape: f32[2,128], index: 3, kind: output, shape index: {}]  }
   0x1   :  { %s9_s14 = sshll.u32 %s240_s0, 4  ;;  %s10_s14 = int_to_ptr.hbm [resolvable:$true] %s9_s14 }
   0x2   :  { %12 = dma.hbm_to_smem %s10_s14, 16, %s204_s15, [#allocation2] }
   0x3   :  { %196 = dma.done.wait [#allocation2], 16 }
   0x4   :  { %197 = vsyncadd [#allocation2], 4294967280 }
   0x5   :  { %15 = sfence }
   0x6   :  { %16 = vsyncpa [#allocation5], 0 }
   0x7   :  { %17 = vsyncpa [#allocation8], 0 }
   0x8   :  { %18 = vsyncpa [#allocation6], 0  ;;  %s24_s18 = sshll.u32 %s241_s1, 4  ;;  %s205_s19 = smov [#allocation4]   ;;  %s25_s18 = int_to_ptr.hbm [resolvable:$true] %s24_s18 }
   0x9   :  { %s26_s20 = sshll.u32 %s205_s19, 4  ;;  %s35_s0 = sshll.u32 %s242_s2, 4  ;;  %s27_s20 = int_to_ptr.vmem [resolvable:$true] %s26_s20  ;;  %s36_s0 = int_to_ptr.hbm [resolvable:$true] %s35_s0 }
   0xa   :  { %29 = dma.hbm_to_vmem [thread:$0]  %s25_s18, 32, %s27_s20, [#allocation5]  }
   0xb   :  { %s206_s23 = smov [#allocation7]  }
   0xc   :  { %s37_s24 = sshll.u32 %s206_s23, 4  ;;  %s38_s24 = int_to_ptr.vmem [resolvable:$true] %s37_s24 }
   0xd   :  { %40 = dma.hbm_to_vmem [thread:$0]  %s36_s0, 32, %s38_s24, [#allocation8]  }
   0xe   :  { %198 = dma.done.wait [#allocation5], 32  }
   0xf   :  { %199 = vsyncadd [#allocation5], 4294967264 }
  0x10   :  { %200 = dma.done.wait [#allocation8], 32  }
  0x11   :  { %201 = vsyncadd [#allocation8], 4294967264  ;;  %s51_s25 = sld [smem:[#allocation3]]  ;;  %v49_v0 = vld [vmem:[#allocation4] sm:$0x3]  ;;  %s207_s2 = smov [#allocation9]  }
  0x12   :  { %s102_s1 = sld [smem:[#allocation3 + $0x1]]  ;;  %v50_v1 = vld [vmem:[#allocation7] sm:$0x3]  ;;  %v63_v4 = vmul.f32 %v49_v0, %v49_v0  ;;  %s89_s4 = sshll.u32 %s207_s2, 4  ;;  %s90_s4 = int_to_ptr.vmem [resolvable:$true] %s89_s4 }
  0x13   :  { %s103_s26 = sld [smem:[#allocation3 + $0x2]]  ;;  %v68_v7 = vmul.f32 %v50_v1, %v49_v0  ;;  %v73_v8 = vmul.f32 %v50_v1, %v50_v1  ;;  %s91_s7 = sshll.u32 %s243_s3, 4  ;;  %s92_s7 = int_to_ptr.hbm [resolvable:$true] %s91_s7 }
  0x14   :  { %s104_s27 = sld [smem:[#allocation3 + $0x3]]  ;;  %v78_v11 = vmul.f32 %v63_v4, %v49_v0 }
  0x15   :  { %s105_s28 = sld [smem:[#allocation3 + $0x4]] }
  0x16   :  { %s106_s29 = sld [smem:[#allocation3 + $0x5]]  ;;  %v79_v18 = vmul.f32 %v78_v11, %v73_v8 }
  0x17   :  { %s107_s30 = sld [smem:[#allocation3 + $0x6]]  ;;  %v52_v2 = vstv %s51_s25 }
  0x18   :  { %v55_v3 = vstv %s102_s1 }
  0x19   :  { %v56_v5 = vmul.f32 %v55_v3, %v49_v0  ;;  %v59_v6 = vstv %s103_s26 }
  0x1a   :  { %v60_v9 = vmul.f32 %v59_v6, %v50_v1  ;;  %v64_v10 = vstv %s104_s27 }
  0x1b   :  { %v57_v12 = vadd.f32 %v56_v5, %v52_v2  ;;  %v65_v13 = vmul.f32 %v64_v10, %v63_v4  ;;  %v69_v14 = vstv %s105_s28 }
  0x1c   :  { %v74_v15 = vstv %s106_s29  ;;  %v70_v17 = vmul.f32 %v69_v14, %v68_v7 }
  0x1d   :  { %v61_v16 = vadd.f32 %v60_v9, %v57_v12  ;;  %v80_v19 = vstv %s107_s30  ;;  %v75_v21 = vmul.f32 %v74_v15, %v73_v8 }
  0x1e   :  { %v81_v23 = vmul.f32 %v80_v19, %v79_v18 }
  0x1f   :  { %v66_v20 = vadd.f32 %v65_v13, %v61_v16 }
  0x21   :  { %v71_v22 = vadd.f32 %v70_v17, %v66_v20 }
  0x23   :  { %v76_v24 = vadd.f32 %v75_v21, %v71_v22 }
  0x25   :  { %v82_v25 = vadd.f32 %v81_v23, %v76_v24 }
  0x27   :  { %83 = vst [vmem:[#allocation9] sm:$0x3] %v82_v25 }
  0x28   :  { %94 = dma.vmem_to_hbm [thread:$0]  %s90_s4, 32, %s92_s7, [#allocation6]  }
  0x29   :  { %202 = dma.done.wait [#allocation6], 32  }
  0x2a   :  { %203 = vsyncadd [#allocation6], 4294967264 }
  0x2b   :  { %99 = vsyncpa [#allocation5], 1 }
  0x2c   :  { %100 = vsyncpa [#allocation8], 1 }
  0x2d   :  { %101 = vsyncpa [#allocation6], 1 }

</bundles_post_ra>
